<compile_context>
chip_gen: v5e
topology: v5e:2x2
jax: 0.10.0
libtpu: 0.0.40
codegen_flags: <defaults>
</compile_context>

<pallas_src>
import jax
import jax.numpy as jnp
from jax.experimental import pallas as pl
from jax.experimental.pallas import tpu as pltpu

_LN_EPS = 1e-5


def _pos_emb_ln_kernel(x_ref, pos_ref, gamma_ref, beta_ref, o_ref):
    # x_ref:     (TS, E)   one (batch, seq-tile) slab (batch dim squeezed)
    # pos_ref:   (TS, E)   positional-embedding tile (shared across batch;
    #                      block index constant over the inner batch axis,
    #                      so its DMA is skipped between consecutive steps)
    # gamma_ref: (1, E)    LayerNorm weight
    # beta_ref:  (1, E)    LayerNorm bias
    # o_ref:     (TS, E)
    x = x_ref[...].astype(jnp.float32)
    pos = pos_ref[...].astype(jnp.float32)

    e = x + pos                                        # (TS, E), f32

    # Single-pass statistics over E (lane axis): sum and sum-of-squares.
    inv_e = jnp.float32(1.0 / e.shape[-1])
    s1 = jnp.sum(e, axis=-1, keepdims=True)
    s2 = jnp.sum(e * e, axis=-1, keepdims=True)
    mu = s1 * inv_e
    var = jnp.maximum(s2 * inv_e - mu * mu, 0.0)
    rstd = jax.lax.rsqrt(var + _LN_EPS)

    gamma = gamma_ref[...].astype(jnp.float32)         # (1, E) broadcasts
    beta = beta_ref[...].astype(jnp.float32)
    o_ref[...] = ((e - mu) * rstd * gamma + beta).astype(o_ref.dtype)


def _pick_seq_tile(S, E, itemsize, B, target_tile_bytes=2 << 20):
    """Pick a bounded, sublane-aligned sequence tile.

    - Aligned to the dtype's sublane packing (8 rows f32, 16 rows bf16).
    - Budgeted against the in-kernel f32 intermediates (E * 4 bytes / row),
      capped at ~2 MiB per tile so 6 pipeline buffers + f32 temps stay well
      under v7x's 64 MiB VMEM (and v5e/v6e's scoped limits).
    - Never returns the whole (possibly huge) S; the wrapper pads S up to a
      multiple of the returned tile instead.
    - If the resulting grid would have a single total step, halve the tile so
      both v7x TensorCores get work.
    """
    align = max(8, 32 // max(1, itemsize))             # 8 (f32), 16 (bf16)
    row_f32_bytes = E * 4                              # f32 intermediates
    cap_rows = max(align, (target_tile_bytes // row_f32_bytes) // align * align)

    s_aligned = -(-S // align) * align                 # round S up to align
    ts = min(cap_rows, s_aligned)

    # Megacore utilization: guarantee >= 2 total grid steps when possible.
    n_s = -(-s_aligned // ts)
    if B * n_s < 2 and s_aligned >= 2 * align:
        half = -(-s_aligned // 2)
        ts = -(-half // align) * align
    return ts


def positional_embedding_forward(x, pos_table, gamma, beta):
    """x: (B, S, E); pos_table: (S, E); gamma/beta: (E,).  Returns (B, S, E)."""
    B, S, E = x.shape
    assert pos_table.shape == (S, E), "pos_table must be (seq_len, embed_size)"
    gamma2 = gamma.reshape(1, E)
    beta2 = beta.reshape(1, E)

    itemsize = jnp.dtype(x.dtype).itemsize
    TS = _pick_seq_tile(S, E, itemsize, B)

    # Pad S up to a multiple of TS (only when needed); padded rows produce
    # garbage LayerNorm stats but are sliced off below, never read.
    S_pad = -(-S // TS) * TS
    if S_pad != S:
        x = jnp.pad(x, ((0, 0), (0, S_pad - S), (0, 0)))
        pos_table = jnp.pad(pos_table, ((0, S_pad - S), (0, 0)))
    n_s = S_pad // TS

    # VMEM budget: (x + out + pos) tiles double-buffered in the boundary dtype
    # plus the in-kernel f32 intermediates (~3-4 tiles worth) plus slack.
    tile_io_bytes = TS * E * itemsize
    tile_f32_bytes = TS * E * 4
    vmem_limit = int(
        min(max(6 * tile_io_bytes + 4 * tile_f32_bytes + (4 << 20), 32 << 20),
            48 << 20))

    # Grid: (seq-tiles, batch).  Batch innermost -> pos tile re-fetch skipped.
    out = pl.pallas_call(
        _pos_emb_ln_kernel,
        out_shape=jax.ShapeDtypeStruct((B, S_pad, E), x.dtype),
        grid_spec=pltpu.PrefetchScalarGridSpec(
            num_scalar_prefetch=0,
            grid=(n_s, B),
            in_specs=[
                pl.BlockSpec((pl.Squeezed(), TS, E), lambda s, b: (b, s, 0)),
                pl.BlockSpec((TS, E), lambda s, b: (s, 0)),        # pos tile
                pl.BlockSpec((1, E), lambda s, b: (0, 0)),         # gamma
                pl.BlockSpec((1, E), lambda s, b: (0, 0)),         # beta
            ],
            out_specs=pl.BlockSpec((pl.Squeezed(), TS, E),
                                   lambda s, b: (b, s, 0)),
        ),
        compiler_params=pltpu.CompilerParams(
            dimension_semantics=("parallel", "parallel"),
            vmem_limit_bytes=vmem_limit,
        ),
    )(x, pos_table, gamma2, beta2)

    if S_pad != S:
        out = out[:, :S, :]
    return out


def reference_forward(x, pos_table, gamma, beta, eps=_LN_EPS):
    e = x.astype(jnp.float32) + pos_table.astype(jnp.float32)[None, :, :]
    mu = jnp.mean(e, axis=-1, keepdims=True)
    var = jnp.mean((e - mu) ** 2, axis=-1, keepdims=True)
    y = (e - mu) / jnp.sqrt(var + eps) * gamma + beta
    return y.astype(x.dtype)


if __name__ == "__main__":
    # Small, lane-dense test shapes: batch=2, seq_len=16, embed_size=128.
    # (E is a multiple of 128 so stores are full unmasked vst.)
    B, S, E = 2, 16, 128

    key = jax.random.PRNGKey(0)
    k_x, k_pos = jax.random.split(key)

    x = jax.random.normal(k_x, (B, S, E), dtype=jnp.float32)

    # Deterministic parameter init (shapes per nn.Embedding / nn.LayerNorm):
    #   position_embedding.weight ~ N(0, 1), shape (seq_len, embed_size)
    #   layernorm.weight = ones(E), layernorm.bias = zeros(E)
    pos_table = jax.random.normal(k_pos, (S, E), dtype=jnp.float32)
    gamma = jnp.ones((E,), dtype=jnp.float32)
    beta = jnp.zeros((E,), dtype=jnp.float32)

    # f32 boundary
    out = positional_embedding_forward(x, pos_table, gamma, beta)
    out = jax.block_until_ready(out)
    ref = reference_forward(x, pos_table, gamma, beta)
    assert out.shape == (B, S, E)
    assert jnp.allclose(out, ref, atol=1e-5, rtol=1e-5), "f32 mismatch vs reference"

    # bf16 boundary (HBM traffic halved; in-kernel compute stays f32)
    xb = x.astype(jnp.bfloat16)
    pb = pos_table.astype(jnp.bfloat16)
    outb = jax.block_until_ready(positional_embedding_forward(xb, pb, gamma, beta))
    refb = reference_forward(xb, pb, gamma, beta)
    assert outb.dtype == jnp.bfloat16
    assert jnp.allclose(outb.astype(jnp.float32), refb.astype(jnp.float32),
                        atol=3e-2, rtol=3e-2), "bf16 mismatch vs reference"

    # Awkward (non-divisible, odd) sequence length exercises the padded path.
    S2 = 23
    x2 = jax.random.normal(k_x, (1, S2, E), dtype=jnp.float32)
    p2 = jax.random.normal(k_pos, (S2, E), dtype=jnp.float32)
    out2 = jax.block_until_ready(positional_embedding_forward(x2, p2, gamma, beta))
    ref2 = reference_forward(x2, p2, gamma, beta)
    assert out2.shape == (1, S2, E)
    assert jnp.allclose(out2, ref2, atol=1e-5, rtol=1e-5), "padded-S mismatch"

    print("KERNEL_OK")
</pallas_src>

<mosaic_0001>
module attributes {stable_mosaic.version = 11 : i64} {
  func.func @_pos_emb_ln_kernel(%arg0: i32, %arg1: i32, %arg2: memref<1x16x128xf32, #tpu.memory_space<vmem>>, %arg3: memref<16x128xf32, #tpu.memory_space<vmem>>, %arg4: memref<1x128xf32, #tpu.memory_space<vmem>>, %arg5: memref<1x128xf32, #tpu.memory_space<vmem>>, %arg6: memref<1x16x128xf32, #tpu.memory_space<vmem>>) attributes {dimension_semantics = [#tpu.dimension_semantics<parallel>, #tpu.dimension_semantics<parallel>], iteration_bounds = array<i64: 1, 2>, scalar_prefetch = 0 : i64, scratch_operands = 0 : i64, tpu.core_type = #tpu.core_type<tc>, window_params = [{transform_indices = @transform_0, window_bounds = array<i64: 1, 16, 128>}, {transform_indices = @transform_1, window_bounds = array<i64: 16, 128>}, {pipeline_mode = #tpu.pipeline_mode<synchronous>, transform_indices = @transform_2, window_bounds = array<i64: 1, 128>}, {pipeline_mode = #tpu.pipeline_mode<synchronous>, transform_indices = @transform_3, window_bounds = array<i64: 1, 128>}, {transform_indices = @transform_4, window_bounds = array<i64: 1, 16, 128>}]} {
    %c0 = arith.constant 0 : index
    %c0_0 = arith.constant 0 : index
    %c0_1 = arith.constant 0 : index
    %0 = vector.load %arg2[%c0, %c0_0, %c0_1] : memref<1x16x128xf32, #tpu.memory_space<vmem>>, vector<1x16x128xf32>
    %1 = vector.shape_cast %0 : vector<1x16x128xf32> to vector<16x128xf32>
    %c0_2 = arith.constant 0 : index
    %c0_3 = arith.constant 0 : index
    %2 = vector.load %arg3[%c0_2, %c0_3] : memref<16x128xf32, #tpu.memory_space<vmem>>, vector<16x128xf32>
    %3 = arith.addf %1, %2 : vector<16x128xf32>
    %cst = arith.constant dense<0.000000e+00> : vector<16xf32>
    %4 = vector.multi_reduction <add>, %3, %cst [1] : vector<16x128xf32> to vector<16xf32>
    %5 = vector.shape_cast %4 : vector<16xf32> to vector<16x1xf32>
    %6 = arith.mulf %3, %3 : vector<16x128xf32>
    %cst_4 = arith.constant dense<0.000000e+00> : vector<16xf32>
    %7 = vector.multi_reduction <add>, %6, %cst_4 [1] : vector<16x128xf32> to vector<16xf32>
    %8 = vector.shape_cast %7 : vector<16xf32> to vector<16x1xf32>
    %cst_5 = arith.constant 7.812500e-03 : f32
    %9 = vector.broadcast %cst_5 : f32 to vector<16x1xf32>
    %10 = arith.mulf %5, %9 : vector<16x1xf32>
    %cst_6 = arith.constant 7.812500e-03 : f32
    %11 = vector.broadcast %cst_6 : f32 to vector<16x1xf32>
    %12 = arith.mulf %8, %11 : vector<16x1xf32>
    %13 = arith.mulf %10, %10 : vector<16x1xf32>
    %14 = arith.subf %12, %13 : vector<16x1xf32>
    %cst_7 = arith.constant 0.000000e+00 : f32
    %15 = vector.broadcast %cst_7 : f32 to vector<16x1xf32>
    %16 = arith.maximumf %14, %15 : vector<16x1xf32>
    %cst_8 = arith.constant 9.99999974E-6 : f32
    %17 = vector.broadcast %cst_8 : f32 to vector<16x1xf32>
    %18 = arith.addf %16, %17 : vector<16x1xf32>
    %19 = math.rsqrt %18 : vector<16x1xf32>
    %c0_9 = arith.constant 0 : index
    %c0_10 = arith.constant 0 : index
    %20 = vector.load %arg4[%c0_9, %c0_10] : memref<1x128xf32, #tpu.memory_space<vmem>>, vector<1x128xf32>
    %c0_11 = arith.constant 0 : index
    %c0_12 = arith.constant 0 : index
    %21 = vector.load %arg5[%c0_11, %c0_12] : memref<1x128xf32, #tpu.memory_space<vmem>>, vector<1x128xf32>
    %22 = vector.broadcast %10 : vector<16x1xf32> to vector<16x128xf32>
    %23 = arith.subf %3, %22 : vector<16x128xf32>
    %24 = vector.broadcast %19 : vector<16x1xf32> to vector<16x128xf32>
    %25 = arith.mulf %23, %24 : vector<16x128xf32>
    %26 = vector.broadcast %20 : vector<1x128xf32> to vector<16x128xf32>
    %27 = arith.mulf %25, %26 : vector<16x128xf32>
    %28 = vector.broadcast %21 : vector<1x128xf32> to vector<16x128xf32>
    %29 = arith.addf %27, %28 : vector<16x128xf32>
    %c0_13 = arith.constant 0 : index
    %c0_14 = arith.constant 0 : index
    %c0_15 = arith.constant 0 : index
    %30 = vector.load %arg6[%c0_13, %c0_14, %c0_15] : memref<1x16x128xf32, #tpu.memory_space<vmem>>, vector<1x16x128xf32>
    %31 = vector.shape_cast %30 : vector<1x16x128xf32> to vector<16x128xf32>
    %32 = vector.shape_cast %29 : vector<16x128xf32> to vector<1x16x128xf32>
    tpu.vector_store %arg6[%c0_13, %c0_14, %c0_15], %32 {strides = array<i32>} : memref<1x16x128xf32, #tpu.memory_space<vmem>>, vector<1x16x128xf32>,
    return
  }
  func.func @transform_0(%arg0: i32, %arg1: i32) -> (i32, i32, i32) {
    %c0_i32 = arith.constant 0 : i32
    %c0_i32_0 = arith.constant 0 : i32
    return %arg1, %arg0, %c0_i32 : i32, i32, i32
  }
  func.func @transform_1(%arg0: i32, %arg1: i32) -> (i32, i32) {
    %c0_i32 = arith.constant 0 : i32
    %c0_i32_0 = arith.constant 0 : i32
    return %arg0, %c0_i32 : i32, i32
  }
  func.func @transform_2(%arg0: i32, %arg1: i32) -> (i32, i32) {
    %c0_i32 = arith.constant 0 : i32
    %c0_i32_0 = arith.constant 0 : i32
    %c0_i32_1 = arith.constant 0 : i32
    return %c0_i32, %c0_i32_0 : i32, i32
  }
  func.func @transform_3(%arg0: i32, %arg1: i32) -> (i32, i32) {
    %c0_i32 = arith.constant 0 : i32
    %c0_i32_0 = arith.constant 0 : i32
    %c0_i32_1 = arith.constant 0 : i32
    return %c0_i32, %c0_i32_0 : i32, i32
  }
  func.func @transform_4(%arg0: i32, %arg1: i32) -> (i32, i32, i32) {
    %c0_i32 = arith.constant 0 : i32
    %c0_i32_0 = arith.constant 0 : i32
    return %arg1, %arg0, %c0_i32 : i32, i32, i32
  }
}

</mosaic_0001>

<bundles_post_ra>
// kernel: tpu_custom_call.1
= control target key start
LH: loop header
LB: loop body
LE: loop exit
PB: predicated region body
PF: predicated region fallthrough
CT: control target
= control target key end

     0   :  { %s892_s0 = inlined_call_operand.hbm [shape: f32[2,16,128], index: 0, kind: input, shape index: {}]   ;;  %s893_s1 = inlined_call_operand.hbm [shape: f32[16,128], index: 1, kind: input, shape index: {}]   ;;  %s894_s2 = inlined_call_operand.vmem [shape: f32[1,128], index: 2, kind: input, shape index: {}]   ;;  %s895_s3 = inlined_call_operand.vmem [shape: f32[1,128], index: 3, kind: input, shape index: {}]   ;;  %s896_s4 = inlined_call_operand.hbm [shape: f32[2,16,128], index: 4, kind: output, shape index: {}]  }
   0x1   :  { %900 = sst [smem:[#allocation12_spill]] %s893_s1 }
   0x2   :  { %9 = vsyncpa [#allocation3], 0 }
   0x3   :  { %11 = vsyncpa [#allocation3 + $0x1], 0 }
   0x4   :  { %12 = vsyncpa [#allocation6], 0 }
   0x5   :  { %13 = vsyncpa [#allocation4], 0 }
   0x6   :  { %15 = vsyncpa [#allocation4 + $0x1], 0  ;;  %s727_s15 = smov 0   ;;  %s729_s16 = smov 0  }
   0x7   :  { %s731_s17 = smov 0   ;;  %s733_s18 = smov 0  }
   0x8   :  { %s735_s19 = smov 0   ;;  %s737_s20 = smov 0  }
   0x9 LB: > { %s447_s21 = sadd.s32 4294967295, %s695_s20   ;;  %s448_s22 = sadd.s32 4294967294, %s695_s20   ;;  %s695_s20 = sphi %s737_s20, %s21_s20   ;;  %s691_s19 = sphi %s735_s19, %s917_s19   ;;  %s687_s18 = sphi %s733_s18, %s916_s18   ;;  %s683_s17 = sphi %s731_s17, %s915_s17   ;;  %s679_s16 = sphi %s729_s16, %s914_s16   ;;  %s675_s15 = sphi %s727_s15, %s913_s15  }
   0xa   : > { %p55_p0 = scmp.ne.s32.totalorder %s679_s16, %s675_s15  ;;  %p761_p1 = scmp.eq.s32.totalorder %s447_s21, 0 }
   0xb   : > { %p765_p2 = scmp.eq.s32.totalorder %s447_s21, 1  ;;  %p155_p3 = scmp.eq.s32.totalorder %s448_s22, 1 }
   0xc   : > { %p771_p4 = por %p761_p1, %p55_p0  ;;  %p449_p5 = scmp.ge.s32.totalorder %s695_s20, 1 }
   0xd   : > { %p776_p6 = por %p155_p3, %p55_p0  ;;  %p162_p7 = scmp.lt.s32.totalorder %s695_s20, 3 }
   0xe   : > { %s905_s1 = sld [smem:[#allocation12_spill]]  ;;  %s697_s5 = smov [#allocation5]  }
   0xf   : > { %p784_p8 = pnand %p449_p5, %p162_p7  ;;  %s178_s6 = sshll.u32 %s697_s5, 4  ;;  %s179_s6 = int_to_ptr.vmem [resolvable:$true] %s178_s6 }
  0x10   : > { %p451_p11 = scmp.ge.s32.totalorder %s695_s20, 2  ;;  %s897_s7 = smov 128  }
  0x11   : > { %p474_p9 = pneg %p784_p8  ;;  %s898_s8 = smov 8  }
  0x12   : > { %s30_s9 = sadd.s32 1, %s691_s19  ;;  %s42_s10 = sadd.s32 1, %s683_s17 }
  0x13   : > { %p475_p10 = pnand %p474_p9, %p761_p1  ;;  %p31_p12 = scmp.ge.s32.totalorder %s30_s9, 2 }
  0x14   : > { %s176_s29 = sshll.u32 %s905_s1, 4  ;;  %p49_p13 = scmp.ne.s32.totalorder %s683_s17, %s679_s16  ;;  %s177_s29 = int_to_ptr.hbm [resolvable:$true] %s176_s29 }
  0x15   : > { %477 = dma.hbm_to_vmem [thread:$0]  (!%p475_p10), %s177_s29, 256, %s179_s6, [#allocation6], %s897_s7, %s897_s7, %s898_s8  }
  0x16   : > { %p50_p0 = scmp.eq.s32.totalorder %s695_s20, 0  ;;  %s919_s9 = smov (%p31_p12, %s30_s9), 0 }
  0x17   : > { %907 = sst [smem:[#allocation11_spill]] %s919_s9  ;;  %p809_p5 = por %p765_p2, %p49_p13 }
  0x18   : > { %p803_p3 = por %p50_p0, %p49_p13  ;;  %s37_s13 = ssub.s32 %s691_s19, %s919_s9 }
  0x19   : > { %p487_p7 = scmp.lt.s32.totalorder %s695_s20, 2  ;;  %p40_p9 = scmp.eq.s32.totalorder %s37_s13, 0 }
  0x1a   : > { %s198_s14 = sand.u32 1, %s683_s17   ;;  %s464_s27 = sshll.u32 %s691_s19, 4 }
  0x1b   : > { %s452_s21 = sshll.u32 %s198_s14, 4  ;;  %s209_s5 = scalar_lea.hbm %s892_s0, %s464_s27 }
  0x1c   : > { %s818_s22 = scalar_select %p40_p9, %s683_s17, %s42_s10  }
  0x1d   : > { %s202_s6 = scalar_lea.vmem [#allocation2], %s452_s21  ;;  %s210_s24 = sshll.u32 %s209_s5, 4  ;;  %s211_s24 = int_to_ptr.hbm [resolvable:$true] %s210_s24 }
  0x1e   : > { %s212_s7 = sshll.u32 %s202_s6, 4  ;;  %p479_p2 = pnand %p487_p7, %p803_p3  ;;  %s213_s7 = int_to_ptr.vmem [resolvable:$true] %s212_s7 }
  0x1f   : > { %s199_s8 = scalar_lea.sflag [#allocation3], %s198_s14  ;;  %s910_s1 = smov 8  }
  0x20   : > { %s911_s9 = smov 128   ;;  %224 = sbr.rel (%p784_p8) target bundleno = 206 (0xce), region = 36 }
  0x21   : > { %481 = dma.hbm_to_vmem [thread:$0]  (!%p479_p2), %s211_s24, 256, %s213_s7, %s199_s8, %s911_s9, %s911_s9, %s910_s1  }
  0x22   : > { %s832_s10 = sand.u32 (!%p784_p8), 1, %s679_s16  }
  0x23   : > { %s456_s13 = sshll.u32 (!%p784_p8), %s832_s10, 4  ;;  %s227_s21 = scalar_lea.sflag (!%p784_p8), [#allocation3], %s832_s10 }
  0x24   : > { %s230_s11 = scalar_lea.vmem (!%p784_p8), [#allocation2], %s456_s13 }
  0x25   : > { %662 = dma.done.wait (%p771_p4), %s227_s21, 256  }
  0x26   : > { %664 = vsyncadd (%p771_p4), %s227_s21, 4294967040 }
  0x27   : > { %666 = dma.done.wait (%p761_p1), [#allocation6], 256  }
  0x28   : > { %668 = vsyncadd (%p761_p1), [#allocation6], 4294967040  ;;  %v264_v0 = vld [vmem:[%s230_s11] sm:$0xff]  ;;  %v265_v3 = vld [vmem:[%s230_s11 + $0x8] sm:$0xff]  ;;  %s465_s7 = sshll.u32 %s687_s18, 4  ;;  %s260_s8 = scalar_lea.vmem [#allocation7], %s456_s13 }
  0x29   : > { %v266_v1 = vld [vmem:[#allocation5] sm:$0xff]  ;;  %v267_v4 = vld [vmem:[#allocation5 + $0x8] sm:$0xff]  ;;  %s344_s27 = scalar_lea.hbm %s896_s4, %s465_s7  ;;  %s345_s28 = sshll.u32 %s260_s8, 4  ;;  %s346_s28 = int_to_ptr.vmem [resolvable:$true] %s345_s28 }
  0x2a   : > { %v268_v2 = vadd.f32 %v266_v1, %v264_v0  ;;  %v269_v6 = vadd.f32 %v267_v4, %v265_v3  ;;  %v543_v32 = vld [vmem:[%s894_s2] ss:$0 sm:$0xff]  ;;  %s347_s18 = sshll.u32 %s344_s27, 4  ;;  %s331_s29 = scalar_lea.sflag [#allocation4], %s832_s10  ;;  %s348_s18 = int_to_ptr.hbm [resolvable:$true] %s347_s18 }
  0x2b   : > { %v544_v35 = vld [vmem:[%s895_s3] ss:$0 sm:$0xff]  ;;  %s623_s5 = sshra.s32 %s348_s18, 4  ;;  %s629_s21 = scalar_lea.hbm %s896_s4, 32  ;;  %s624_s5 = int_to_ptr.hbm [resolvable:$true] %s623_s5 }
  0x2c   : > { %270 = vadd.xlane.f32.xlu0 %v268_v2  ;;  %v274_v5 = vmul.f32 %v268_v2, %v268_v2  ;;  %v275_v7 = vmul.f32 %v269_v6, %v269_v6  ;;  %s625_s6 = scalar_lea.hbm %s624_s5, 16  ;;  %p630_p10 = scmp.lt.s32.totalorder %s624_s5, %s896_s4 }
  0x2d   : > { %p626_p1 = scmp.ne.s32.totalorder %s624_s5, %s625_s6  ;;  %p631_p12 = scmp.lt.s32.totalorder %s629_s21, %s625_s6 }
  0x2e   : > { %276 = vadd.xlane.f32.xlu1 %v274_v5 }
  0x2f   : > { %p627_p4 = pnand %p626_p1, %p809_p5  ;;  %p632_p13 = por %p631_p12, %p630_p10 }
  0x31   : > { %p628_p8 = pneg %p627_p4 }
  0x33   : > { %p633_p0 = pnand %p632_p13, %p628_p8 }
  0x34   : > { %272 = vadd.xlane.f32.xlu0 %v269_v6 }
  0x36   : > { %278 = vadd.xlane.f32.xlu1 %v275_v7 }
  0x9f   : > { %v271_v8 = vpop.xlane.xlu0 %270 }
  0xa0   : > { %v280_v9 = vmul.f32 0.0078125, %v271_v8 }
  0xa1   : > { %v277_v10 = vpop.xlane.xlu1 %276 }
  0xa2   : > { %v284_v11 = vmul.f32 %v280_v9, %v280_v9  ;;  %v282_v12 = vmul.f32 0.0078125, %v277_v10  ;;  %v314_v31 = vsub.f32 %v268_v2, %v280_v9 }
  0xa4   : > { %v286_v13 = vsub.f32 %v282_v12, %v284_v11 }
  0xa6   : > { %v288_v14 = vmax.f32 %v286_v13, 0.0 }
  0xa7   : > { %v273_v15 = vpop.xlane.xlu0 %272 }
  0xa8   : > { %v290_v16 = vadd.f32 1e-05, %v288_v14  ;;  %v281_v17 = vmul.f32 0.0078125, %v273_v15 }
  0xa9   : > { %v279_v18 = vpop.xlane.xlu1 %278 }
  0xaa   : > { %545 = vrsqrt.f32 %v290_v16  ;;  %v285_v19 = vmul.f32 %v281_v17, %v281_v17  ;;  %v283_v20 = vmul.f32 0.0078125, %v279_v18  ;;  %vm298_vm1 = vweird.f32 %v290_v16 }
  0xab   : > { %v315_v43 = vsub.f32 %v269_v6, %v281_v17 }
  0xac   : > { %v287_v21 = vsub.f32 %v283_v20, %v285_v19 }
  0xae   : > { %v289_v22 = vmax.f32 %v287_v21, 0.0 }
  0xb0   : > { %v546_v23 = vpop.eup %545  ;;  %v291_v25 = vadd.f32 1e-05, %v289_v22 }
  0xb1   : > { %v293_v24 = vmul.f32 %v546_v23, %v290_v16  ;;  %vm299_vm0 = vweird.f32 %v546_v23 }
  0xb2   : > { %547 = vrsqrt.f32 %v291_v25  ;;  %vm300_vm2 = vmor %vm298_vm1, %vm299_vm0  ;;  %vm308_vm4 = vweird.f32 %v291_v25 }
  0xb3   : > { %v294_v26 = vmul.f32 %v546_v23, %v293_v24 }
  0xb5   : > { %v295_v27 = vmul.f32 0.5, %v294_v26 }
  0xb7   : > { %v296_v28 = vsub.f32 1.5, %v295_v27 }
  0xb8   : > { %v548_v29 = vpop.eup %547 }
  0xb9   : > { %v297_v30 = vmul.f32 %v546_v23, %v296_v28  ;;  %v303_v33 = vmul.f32 %v548_v29, %v291_v25  ;;  %vm309_vm3 = vweird.f32 %v548_v29 }
  0xba   : > { %vm310_vm5 = vmor %vm308_vm4, %vm309_vm3 }
  0xbb   : > { %v301_v34 = vsel %vm300_vm2, %v546_v23, %v297_v30  ;;  %v304_v37 = vmul.f32 %v548_v29, %v303_v33 }
  0xbc   : > { %v316_v36 = vmul.f32 %v314_v31, %v301_v34 }
  0xbd   : > { %v305_v39 = vmul.f32 0.5, %v304_v37 }
  0xbe   : > { %v321_v38 = vmul.f32 %v543_v32, %v316_v36 }
  0xbf   : > { %v306_v41 = vsub.f32 1.5, %v305_v39 }
  0xc0   : > { %v326_v40 = vadd.f32 %v544_v35, %v321_v38 }
  0xc1   : > { %v307_v42 = vmul.f32 %v548_v29, %v306_v41 }
  0xc2   : > { %328 = vst [vmem:[%s260_s8] sm:$0xff] %v326_v40 }
  0xc3   : > { %v311_v44 = vsel %vm310_vm5, %v548_v29, %v307_v42 }
  0xc4   : > { %v317_v45 = vmul.f32 %v315_v43, %v311_v44 }
  0xc6   : > { %v322_v46 = vmul.f32 %v543_v32, %v317_v45 }
  0xc8   : > { %v327_v47 = vadd.f32 %v544_v35, %v322_v46 }
  0xca   : > { %329 = vst [vmem:[%s260_s8 + $0x8] sm:$0xff] %v327_v47 }
  0xcb   : > { %636 = shalt.err (!%p633_p0)
}
  0xcc   : > { %s700_s10 = smov 128   ;;  %s701_s23 = smov 8  }
  0xcd   : > { %472 = dma.vmem_to_hbm [thread:$0]  (%p809_p5), %s346_s28, 256, %s348_s18, %s331_s29, %s700_s10, %s700_s10, %s701_s23  }
  0xce PF: > { %s362_s25 = sand.u32 1, %s675_s15   ;;  %p483_p3 = pnand %p451_p11, %p776_p6 }
  0xcf   : > { %s363_s30 = scalar_lea.sflag [#allocation4], %s362_s25 }
  0xd0   : > { %p484_p7 = pneg %p483_p3 }
  0xd2   : > { %670 = dma.done.wait (%p484_p7), %s363_s30, 256  }
  0xd3   : > { %672 = vsyncadd (%p484_p7), %s363_s30, 4294967040  ;;  %s21_s20 = sadd.s32 1, %s695_s20   ;;  %s912_s12 = sld [smem:[#allocation11_spill]] }
  0xd4   : > { %p18_p9 = scmp.ge.s32.totalorder %s21_s20, 4   ;;  %s913_s15 = smov %s679_s16 }
  0xd5   : > { %s914_s16 = smov %s683_s17  ;;  %s915_s17 = smov %s818_s22 }
  0xd6   : > { %s916_s18 = smov %s691_s19  ;;  %20 = sbr.rel (!%p18_p9) target bundleno = 9 (0x9), region = 86 }
  0xd9   : > { %s917_s19 = smov %s912_s12 }
  0xdb   :  { %369 = vsyncpa [#allocation3], 1 }
  0xdc   :  { %371 = vsyncpa [#allocation3 + $0x1], 1 }
  0xdd   :  { %372 = vsyncpa [#allocation6], 1 }
  0xde   :  { %373 = vsyncpa [#allocation4], 1 }
  0xdf   :  { %375 = vsyncpa [#allocation4 + $0x1], 1 }

</bundles_post_ra>
